<compile_context>
chip_gen: v6e
topology: v6e:2x2x1
jax: 0.10.0
libtpu: 0.0.40
codegen_flags: <defaults>
</compile_context>

<pallas_src>
import jax
import jax.numpy as jnp
from jax.experimental import pallas as pl
from jax.experimental.pallas import tpu as pltpu


# ----------------------------- kernels --------------------------------------

def _itc_head_kernel_2d(x_ref, w_ref, b_ref, o_ref):
    # x: [tm, H], w: [H, tn] (pre-transposed), b: [1, tn], o: [tm, tn]
    y = jnp.dot(x_ref[...], w_ref[...], preferred_element_type=jnp.float32)
    o_ref[...] = (y + b_ref[...].astype(jnp.float32)).astype(o_ref.dtype)


def _make_itc_head_kernel_3d(tk, H):
    """K(H)-tiled matmul with f32 accumulator scratch (reduction axis innermost)."""
    rem = H % tk  # static

    def kernel(x_ref, w_ref, b_ref, o_ref, acc_ref):
        k = pl.program_id(2)

        @pl.when(k == 0)
        def _init():
            acc_ref[...] = jnp.zeros_like(acc_ref)

        x = x_ref[...]
        w = w_ref[...]
        if rem:
            # Partial last K block: zero the out-of-range tail (the padded
            # region of an input block is undefined, so mask both operands).
            col = jax.lax.broadcasted_iota(jnp.int32, x.shape, 1)
            x = jnp.where(k * tk + col < H, x, 0)
            row = jax.lax.broadcasted_iota(jnp.int32, w.shape, 0)
            w = jnp.where(k * tk + row < H, w, 0)

        acc_ref[...] += jnp.dot(x, w, preferred_element_type=jnp.float32)

        @pl.when(k == pl.num_programs(2) - 1)
        def _finalize():
            o_ref[...] = (acc_ref[...] + b_ref[...].astype(jnp.float32)
                          ).astype(o_ref.dtype)

    return kernel


# --------------------------- tile selection ----------------------------------

_TILE_BUDGET = 16 << 20   # resident-tile budget incl. double buffering
_VMEM_LIMIT = 32 << 20    # scoped VMEM limit: safe on v5e / v6e / v7x


def _candidates(full, caps):
    c = [full] if full <= caps[0] else []
    c += [v for v in caps if v < full]
    return c or [full]


def _pick_tiles(M, E, H, isz, tm, tn, tk):
    tm_c = [tm] if tm is not None else _candidates(M, (1024, 512, 256, 128, 64, 32, 16, 8))
    tn_c = [tn] if tn is not None else _candidates(E, (2048, 1024, 512, 256, 128))

    def bytes_2d(m, n):
        # double-buffered x, weight, output tiles + bias
        return (2 * m * H + 2 * H * n + 2 * m * n + 2 * n) * isz

    def bytes_3d(m, n, k):
        # double-buffered x, weight, output tiles + bias + f32 accumulator
        return (2 * m * k + 2 * k * n + 2 * m * n + 2 * n) * isz + 4 * m * n

    if tk is None:
        # Prefer the 2-D weight-resident path (full H rides in every block).
        fits = [(m, n) for n in tn_c for m in tm_c if bytes_2d(m, n) <= _TILE_BUDGET]
        if fits:
            m, n = max(fits, key=lambda p: (p[0] * p[1], p[1]))
            return m, n, None
        tk_c = _candidates(H, (1024, 512, 256, 128))
    else:
        tk_c = [tk]

    fits = [(m, n, k) for n in tn_c for m in tm_c for k in tk_c
            if bytes_3d(m, n, k) <= _TILE_BUDGET]
    if fits:
        return max(fits, key=lambda p: (p[0] * p[1] * p[2], p[1]))
    return tm_c[-1], tn_c[-1], tk_c[-1]


# ------------------------------ wrapper --------------------------------------

def itc_head_forward(x, weight, bias, *, tm=None, tn=None, tk=None):
    """ITCHead forward: y = x @ weight.T + bias.

    x: [..., H]; weight: [E, H] (PyTorch nn.Linear layout); bias: [E].
    """
    H = x.shape[-1]
    E, H_w = weight.shape
    assert H == H_w, "hidden dims must match"

    lead = x.shape[:-1]
    x2 = x.reshape(-1, H)
    M = x2.shape[0]
    b2 = bias.reshape(1, E)
    # One-time wrapper transpose to [H, E]: feeds the MXU directly without any
    # per-step in-kernel transpose; constant-foldable for static weights.
    w_t = weight.T

    isz = jnp.dtype(x.dtype).itemsize
    if tk is not None and tk >= H:
        tk = None
    tm, tn, tk = _pick_tiles(M, E, H, isz, tm, tn, tk)

    n_e = pl.cdiv(E, tn)
    n_m = pl.cdiv(M, tm)

    if tk is None:
        # 2-D grid, E tiles OUTER / M tiles INNER: the [H, tn] weight block
        # index depends only on the outer axis, so the weight stays
        # VMEM-resident across the inner row loop and streams from HBM once.
        cost = pl.CostEstimate(
            flops=2 * M * H * E,
            transcendentals=0,
            bytes_accessed=(E * H + n_e * M * H + E + M * E) * isz,
        )
        out = pl.pallas_call(
            _itc_head_kernel_2d,
            out_shape=jax.ShapeDtypeStruct((M, E), x.dtype),
            grid_spec=pltpu.PrefetchScalarGridSpec(
                num_scalar_prefetch=0,
                grid=(n_e, n_m),
                in_specs=[
                    pl.BlockSpec((tm, H), lambda j, i: (i, 0)),   # activations
                    pl.BlockSpec((H, tn), lambda j, i: (0, j)),   # weight (resident per E tile)
                    pl.BlockSpec((1, tn), lambda j, i: (0, j)),   # bias
                ],
                out_specs=pl.BlockSpec((tm, tn), lambda j, i: (i, j)),
            ),
            compiler_params=pltpu.CompilerParams(
                # E axis parallel (each TC streams only its share of the
                # weight); M axis sequential so the weight block stays resident.
                dimension_semantics=("parallel", "arbitrary"),
                vmem_limit_bytes=_VMEM_LIMIT,
            ),
            cost_estimate=cost,
        )(x2, w_t, b2)
    else:
        n_k = pl.cdiv(H, tk)
        cost = pl.CostEstimate(
            flops=2 * M * H * E,
            transcendentals=0,
            bytes_accessed=(n_m * E * H + n_e * M * H + E + M * E) * isz,
        )
        out = pl.pallas_call(
            _make_itc_head_kernel_3d(tk, H),
            out_shape=jax.ShapeDtypeStruct((M, E), x.dtype),
            grid_spec=pltpu.PrefetchScalarGridSpec(
                num_scalar_prefetch=0,
                grid=(n_e, n_m, n_k),
                in_specs=[
                    pl.BlockSpec((tm, tk), lambda j, i, k: (i, k)),
                    pl.BlockSpec((tk, tn), lambda j, i, k: (k, j)),
                    pl.BlockSpec((1, tn), lambda j, i, k: (0, j)),
                ],
                out_specs=pl.BlockSpec((tm, tn), lambda j, i, k: (i, j)),
                scratch_shapes=[pltpu.VMEM((tm, tn), jnp.float32)],
            ),
            compiler_params=pltpu.CompilerParams(
                dimension_semantics=("parallel", "arbitrary", "arbitrary"),
                vmem_limit_bytes=_VMEM_LIMIT,
            ),
            cost_estimate=cost,
        )(x2, w_t, b2)

    return out.reshape(*lead, E)


# ------------------------------- test ----------------------------------------

if __name__ == "__main__":
    key = jax.random.PRNGKey(0)
    k_x, k_w, k_b, k_x2, k_w2, k_b2 = jax.random.split(key, 6)

    # --- Case 1: module-like shapes, default (2-D weight-resident) path ------
    B, S, H, E = 2, 8, 32, 64  # batch, seq, hidden_size, embed_size
    x = jax.random.normal(k_x, (B, S, H), dtype=jnp.float32)
    weight = jax.random.normal(k_w, (E, H), dtype=jnp.float32) * 0.02
    bias = jax.random.normal(k_b, (E,), dtype=jnp.float32) * 0.02

    out = jax.block_until_ready(itc_head_forward(x, weight, bias))
    ref = x @ weight.T + bias
    assert out.shape == (B, S, E)
    assert jnp.allclose(out, ref, atol=1e-4, rtol=1e-4)

    # --- Case 2: forced multi-tile 2-D grid (E outer, M inner) ---------------
    M2, H2, E2 = 32, 256, 256
    x_b = jax.random.normal(k_x2, (M2, H2), dtype=jnp.float32)
    w_b = jax.random.normal(k_w2, (E2, H2), dtype=jnp.float32) * 0.02
    b_b = jax.random.normal(k_b2, (E2,), dtype=jnp.float32) * 0.02
    out2 = jax.block_until_ready(itc_head_forward(x_b, w_b, b_b, tm=8, tn=128))
    ref2 = x_b @ w_b.T + b_b
    assert jnp.allclose(out2, ref2, atol=1e-4, rtol=1e-4)

    # --- Case 3: forced H(K)-tiled path with f32 accumulator scratch ---------
    out3 = jax.block_until_ready(
        itc_head_forward(x_b, w_b, b_b, tm=8, tn=128, tk=128))
    assert jnp.allclose(out3, ref2, atol=1e-4, rtol=1e-4)

    print("KERNEL_OK")
</pallas_src>

<mosaic_0001>
module attributes {stable_mosaic.version = 11 : i64} {
  func.func @_itc_head_kernel_2d(%arg0: i32, %arg1: i32, %arg2: memref<16x32xf32, #tpu.memory_space<vmem>>, %arg3: memref<32x64xf32, #tpu.memory_space<vmem>>, %arg4: memref<1x64xf32, #tpu.memory_space<vmem>>, %arg5: memref<16x64xf32, #tpu.memory_space<vmem>>) attributes {dimension_semantics = [#tpu.dimension_semantics<parallel>, #tpu.dimension_semantics<arbitrary>], iteration_bounds = array<i64: 1, 1>, scalar_prefetch = 0 : i64, scratch_operands = 0 : i64, tpu.core_type = #tpu.core_type<tc>, window_params = [{transform_indices = @transform_0, window_bounds = array<i64: 16, 32>}, {transform_indices = @transform_1, window_bounds = array<i64: 32, 64>}, {transform_indices = @transform_2, window_bounds = array<i64: 1, 64>}, {transform_indices = @transform_3, window_bounds = array<i64: 16, 64>}]} {
    %c0 = arith.constant 0 : index
    %c0_0 = arith.constant 0 : index
    %0 = vector.load %arg2[%c0, %c0_0] : memref<16x32xf32, #tpu.memory_space<vmem>>, vector<16x32xf32>
    %c0_1 = arith.constant 0 : index
    %c0_2 = arith.constant 0 : index
    %1 = vector.load %arg3[%c0_1, %c0_2] : memref<32x64xf32, #tpu.memory_space<vmem>>, vector<32x64xf32>
    %cst = arith.constant dense<0.000000e+00> : vector<16x64xf32>
    %2 = tpu.matmul %0, %1, %cst {dimension_numbers = #tpu.dot_dimension_numbers<[1], [0], [0], [1], [0, 0, 1, 1], [], []>} : vector<16x32xf32>, vector<32x64xf32>, vector<16x64xf32> -> vector<16x64xf32>
    %c0_3 = arith.constant 0 : index
    %c0_4 = arith.constant 0 : index
    %3 = vector.load %arg4[%c0_3, %c0_4] : memref<1x64xf32, #tpu.memory_space<vmem>>, vector<1x64xf32>
    %4 = vector.broadcast %3 : vector<1x64xf32> to vector<16x64xf32>
    %5 = arith.addf %2, %4 : vector<16x64xf32>
    %c0_5 = arith.constant 0 : index
    %c0_6 = arith.constant 0 : index
    %6 = vector.load %arg5[%c0_5, %c0_6] : memref<16x64xf32, #tpu.memory_space<vmem>>, vector<16x64xf32>
    tpu.vector_store %arg5[%c0_5, %c0_6], %5 {strides = array<i32>} : memref<16x64xf32, #tpu.memory_space<vmem>>, vector<16x64xf32>,
    return
  }
  func.func @transform_0(%arg0: i32, %arg1: i32) -> (i32, i32) {
    %c0_i32 = arith.constant 0 : i32
    %c0_i32_0 = arith.constant 0 : i32
    return %arg1, %c0_i32 : i32, i32
  }
  func.func @transform_1(%arg0: i32, %arg1: i32) -> (i32, i32) {
    %c0_i32 = arith.constant 0 : i32
    %c0_i32_0 = arith.constant 0 : i32
    return %c0_i32, %arg0 : i32, i32
  }
  func.func @transform_2(%arg0: i32, %arg1: i32) -> (i32, i32) {
    %c0_i32 = arith.constant 0 : i32
    %c0_i32_0 = arith.constant 0 : i32
    return %c0_i32, %arg0 : i32, i32
  }
  func.func @transform_3(%arg0: i32, %arg1: i32) -> (i32, i32) {
    %c0_i32 = arith.constant 0 : i32
    return %arg1, %arg0 : i32, i32
  }
}

</mosaic_0001>

<bundles_post_ra>
// kernel: tpu_custom_call.1
= control target key start
LH: loop header
LB: loop body
LE: loop exit
PB: predicated region body
PF: predicated region fallthrough
CT: control target
= control target key end

     0   :  { %8 = vsyncpa [#allocation3], 0  ;;  %s298_s0 = inlined_call_operand.hbm [shape: f32[16,32], index: 0, kind: input, shape index: {}]   ;;  %s299_s1 = inlined_call_operand.hbm [shape: f32[32,64], index: 1, kind: input, shape index: {}]   ;;  %s300_s2 = inlined_call_operand.vmem [shape: f32[1,64], index: 2, kind: input, shape index: {}]   ;;  %s301_s3 = inlined_call_operand.hbm [shape: f32[16,64], index: 3, kind: output, shape index: {}]  }
   0x1   :  { %9 = vsyncpa [#allocation6], 0 }
   0x2   :  { %10 = vsyncpa [#allocation4], 0  ;;  %s250_s12 = smov [#allocation2]  }
   0x3   :  { %s16_s13 = sshll.u32 %s250_s12, 4  ;;  %s17_s13 = int_to_ptr.vmem [resolvable:$true] %s16_s13 }
   0x4   :  { %s192_s14 = scalar_lea.vmem %s17_s13, 256  ;;  %p197_p1 = scmp.lt.s32.totalorder %s17_s13, %s17_s13 }
   0x5   :  { %p193_p0 = scmp.ne.s32.totalorder %s17_s13, %s192_s14  ;;  %p198_p2 = scmp.lt.s32.totalorder %s192_s14, %s192_s14 }
   0x7   :  { %p199_p3 = por %p198_p2, %p197_p1 }
   0x9   :  { %p200_p4 = pnand %p199_p3, %p193_p0 }
   0xb   :  { %203 = shalt.err (!%p200_p4)
}
   0xc   :  { %s251_s15 = smov 128   ;;  %s252_s16 = smov 8  }
   0xd   :  { %22 = dma.hbm_to_vmem [thread:$0]  %s298_s0, 256, %s17_s13, [#allocation3], %s251_s15, %s251_s15, %s252_s16  }
   0xe   :  { %s253_s19 = smov [#allocation5]  }
   0xf   :  { %s28_s20 = sshll.u32 %s253_s19, 4  ;;  %s29_s20 = int_to_ptr.vmem [resolvable:$true] %s28_s20 }
  0x10   :  { %s212_s21 = scalar_lea.vmem %s29_s20, 512  ;;  %p217_p6 = scmp.lt.s32.totalorder %s29_s20, %s29_s20 }
  0x11   :  { %p213_p5 = scmp.ne.s32.totalorder %s29_s20, %s212_s21  ;;  %p218_p7 = scmp.lt.s32.totalorder %s212_s21, %s212_s21 }
  0x13   :  { %p219_p8 = por %p218_p7, %p217_p6 }
  0x15   :  { %p220_p9 = pnand %p219_p8, %p213_p5 }
  0x17   :  { %223 = shalt.err (!%p220_p9)
}
  0x18   :  { %34 = dma.hbm_to_vmem [thread:$0]  %s299_s1, 512, %s29_s20, [#allocation6], %s251_s15, %s251_s15, %s252_s16  }
  0x19   :  { %244 = dma.done.wait [#allocation3], 256  }
  0x1a   :  { %245 = vsyncadd [#allocation3], 4294967040 }
  0x1b   :  { %246 = dma.done.wait [#allocation6], 512  }
  0x1c   :  { %247 = vsyncadd [#allocation6], 4294966784  ;;  %vm56_vm0 = vcmask 261120   ;;  %v48_v0 = vld [vmem:[#allocation5 + $0x18] sm:$0xff]  ;;  %v47_v1 = vld [vmem:[#allocation5 + $0x10] sm:$0xff]  ;;  %vm138_vm1 = vcmask 523264  }
  0x1d   :  { %168 = vmatprep.subr.mxu0 %v48_v0  ;;  %v43_v2 = vld [vmem:[#allocation2] sm:$0xff]  ;;  %v46_v3 = vld [vmem:[#allocation5 + $0x8] sm:$0xff]  ;;  %v45_v4 = vld [vmem:[#allocation5] sm:$0xff]  ;;  %s254_s24 = smov [#allocation7]  }
  0x1e   :  { %169 = vmatpush3.msra.mxu0 %v48_v0  ;;  %176 = vmatprep.mubr.msk.f32.mxu0 %vm56_vm0, %v43_v2  ;;  %v44_v5 = vld [vmem:[#allocation2 + $0x8] sm:$0xff]  ;;  %v159_v6 = vld [vmem:[%s300_s2] ss:$0 sm:$0xff]  ;;  %s146_s25 = sshll.u32 %s254_s24, 4  ;;  %s147_s25 = int_to_ptr.vmem [resolvable:$true] %s146_s25 }
  0x1f   :  { %170 = vmatprep.subr.mxu0 %v47_v1  ;;  %s224_s26 = scalar_lea.vmem %s147_s25, 256  ;;  %p229_p11 = scmp.lt.s32.totalorder %s147_s25, %s147_s25 }
  0x20   :  { %171 = vmatpush3.msra.mxu0 %v47_v1  ;;  %p225_p10 = scmp.ne.s32.totalorder %s147_s25, %s224_s26  ;;  %p230_p12 = scmp.lt.s32.totalorder %s224_s26, %s224_s26 }
  0x21   :  { %172 = vmatprep.subr.mxu0 %v46_v3 }
  0x22   :  { %173 = vmatpush3.msra.mxu0 %v46_v3  ;;  %p231_p13 = por %p230_p12, %p229_p11 }
  0x23   :  { %174 = vmatprep.subr.mxu0 %v45_v4 }
  0x24   :  { %175 = vmatpush3.msra.mxu0 %v45_v4  ;;  %p232_p0 = pnand %p231_p13, %p225_p10 }
  0x25   :  { %177 = vmatmul.mubr.msk.f32.vlgmr.msra.gmra.mxu0 %vm56_vm0, %v44_v5 }
  0xe5   :  { %v178_v7 = vpop.f32.mrf.mxu0 }
  0xe6   :  { %v135_v8 = vadd.f32 %v178_v7, %v159_v6 }
  0xe7   :  { %v129_v9 = vpop.f32.mrf.mxu0 }
  0xe8   :  { %v130_v10 = vadd.f32 %v159_v6, %v129_v9  ;;  %140 = vst.msk [vmem:[#allocation7 + $0x8] sm:$0xff] %vm138_vm1, %v135_v8 }
  0xea   :  { %139 = vst.msk [vmem:[#allocation7] sm:$0xff] %vm138_vm1, %v130_v10 }
  0xeb   :  { %235 = shalt.err (!%p232_p0)
}
  0xec   :  { %152 = dma.vmem_to_hbm [thread:$0]  %s147_s25, 256, %s301_s3, [#allocation4], %s251_s15, %s251_s15, %s252_s16  }
  0xed   :  { %248 = dma.done.wait [#allocation4], 256  }
  0xee   :  { %249 = vsyncadd [#allocation4], 4294967040 }
  0xef   :  { %156 = vsyncpa [#allocation3], 1 }
  0xf0   :  { %157 = vsyncpa [#allocation6], 1 }
  0xf1   :  { %158 = vsyncpa [#allocation4], 1 }

</bundles_post_ra>
